<compile_context>
chip_gen: v7x
topology: tpu7x:2x2x1
jax: 0.10.0
libtpu: 0.0.40
codegen_flags: <defaults>
</compile_context>

<pallas_src>
import functools

import jax
import jax.numpy as jnp
from jax.experimental import pallas as pl
from jax.experimental.pallas import tpu as pltpu

HIDDEN = 256
OUT_PAD = 8   # padded output lane width (trans=3, quat=4 -> 7 real columns, 1 zero pad)


def _round_up(x, m):
    return ((x + m - 1) // m) * m


def _pose_head_kernel(x_ref, w1_ref, b1_ref, w2_ref, b2_ref, o_ref):
    # hidden = relu(x @ W_mlp + b_mlp)
    h = jnp.dot(x_ref[...], w1_ref[...], preferred_element_type=jnp.float32)
    h = jnp.maximum(h + b1_ref[...], 0.0)

    # fused heads: out[:, 0:3] = trans, out[:, 3:7] = quat (+ [1,0,0,0] folded into bias)
    out = jnp.dot(h, w2_ref[...], preferred_element_type=jnp.float32) + b2_ref[...]

    # normalize quaternion columns (lanes 3..6): q = q * rsqrt(1e-12 + sum(q^2))
    lane = jax.lax.broadcasted_iota(jnp.int32, out.shape, 1)
    qmask = (lane >= 3) & (lane < 7)
    sumsq = jnp.sum(jnp.where(qmask, out * out, 0.0), axis=-1, keepdims=True)
    inv = jax.lax.rsqrt(1e-12 + sumsq)            # EUP, not a VALU divide chain
    o_ref[...] = jnp.where(qmask, out * inv, out).astype(o_ref.dtype)


@functools.partial(jax.jit, static_argnames=("block_m",))
def pose_head_pallas(feat, w_mlp, b_mlp, w_head, b_head, *, block_m=256):
    """feat: (..., F) -> out: (..., 7)  =  cat([trans(3), normalized quat(4)])."""
    orig_shape = feat.shape
    F = orig_shape[-1]
    x = feat.reshape(-1, F)
    N = x.shape[0]

    # Effective row tile: multiple of 8 (sublane), no larger than needed for small N.
    bm = min(block_m, _round_up(N, 8))
    n_pad = _round_up(N, bm)
    if n_pad != N:
        x = jnp.pad(x, ((0, n_pad - N), (0, 0)))

    grid = (n_pad // bm,)
    out_padded = pl.pallas_call(
        _pose_head_kernel,
        out_shape=jax.ShapeDtypeStruct((n_pad, OUT_PAD), jnp.float32),
        grid_spec=pltpu.PrefetchScalarGridSpec(
            num_scalar_prefetch=0,
            grid=grid,
            in_specs=[
                pl.BlockSpec((bm, F), lambda i: (i, 0)),           # feat rows
                pl.BlockSpec((F, HIDDEN), lambda i: (0, 0)),       # W_mlp   (in, 256)
                pl.BlockSpec((1, HIDDEN), lambda i: (0, 0)),       # b_mlp
                pl.BlockSpec((HIDDEN, OUT_PAD), lambda i: (0, 0)), # W_head  (256, 8)
                pl.BlockSpec((1, OUT_PAD), lambda i: (0, 0)),      # b_head  (1, 8)
            ],
            out_specs=pl.BlockSpec((bm, OUT_PAD), lambda i: (i, 0)),
        ),
        compiler_params=pltpu.CompilerParams(
            dimension_semantics=("parallel",),   # lets v7x shard rows across both TCs
        ),
    )(x, w_mlp, b_mlp, w_head, b_head)

    out = out_padded[:N, :7]
    return out.reshape(*orig_shape[:-1], 7)


def init_params(key, in_features):
    """Deterministic synthetic params mirroring PoseHead.__init__ shapes.

    Returned in kernel layout: W as (in, out), biases as (1, out); trans/quat heads
    fused into one (256, 8)-padded matrix with the constant quat bias [1,0,0,0]
    folded into the bias vector. Pad column (index 7) is exactly zero.
    """
    k1, k2, k3, k4, k5 = jax.random.split(key, 5)
    w_mlp = jax.random.normal(k1, (in_features, HIDDEN), jnp.float32) * 0.05
    b_mlp = jax.random.normal(k2, (1, HIDDEN), jnp.float32) * 0.05
    w_trans = jax.random.normal(k3, (HIDDEN, 3), jnp.float32) * 0.05
    b_trans = jax.random.normal(k4, (3,), jnp.float32) * 0.05
    w_quat = jax.random.normal(k5, (HIDDEN, 4), jnp.float32) * 0.05
    b_quat = jnp.zeros((4,), jnp.float32)  # quat.bias.data.zero_()

    w_head = jnp.zeros((HIDDEN, OUT_PAD), jnp.float32)
    w_head = w_head.at[:, 0:3].set(w_trans).at[:, 3:7].set(w_quat)
    quat_const = jnp.array([1.0, 0.0, 0.0, 0.0], jnp.float32)  # the in-forward quat_bias
    b_head = jnp.zeros((1, OUT_PAD), jnp.float32)
    b_head = b_head.at[0, 0:3].set(b_trans).at[0, 3:7].set(b_quat + quat_const)
    return w_mlp, b_mlp, w_head, b_head


def pose_head_ref(feat, w_mlp, b_mlp, w_head, b_head):
    """Plain-JAX reference matching the PyTorch forward semantics."""
    h = jax.nn.relu(feat @ w_mlp + b_mlp[0])
    out = h @ w_head[:, :7] + b_head[0, :7]
    trans = out[..., 0:3]
    quat = out[..., 3:7]
    quat = quat / jnp.sqrt(1e-12 + jnp.sum(quat * quat, axis=-1, keepdims=True))
    return jnp.concatenate([trans, quat], axis=-1)


if __name__ == "__main__":
    key = jax.random.PRNGKey(0)
    in_features = 32
    batch, seq = 2, 8  # 16 rows total

    kx, kp = jax.random.split(key)
    feat = jax.random.normal(kx, (batch, seq, in_features), jnp.float32)
    w_mlp, b_mlp, w_head, b_head = init_params(kp, in_features)

    out = pose_head_pallas(feat, w_mlp, b_mlp, w_head, b_head)
    out = jax.block_until_ready(out)

    ref = pose_head_ref(feat, w_mlp, b_mlp, w_head, b_head)
    assert out.shape == (batch, seq, 7)
    assert jnp.allclose(out, ref, atol=1e-4, rtol=1e-4), "mismatch vs reference"

    print("KERNEL_OK")
</pallas_src>

<mosaic_0001>
module attributes {stable_mosaic.version = 11 : i64} {
  func.func @_pose_head_kernel(%arg0: i32, %arg1: memref<16x32xf32, #tpu.memory_space<vmem>>, %arg2: memref<32x256xf32, #tpu.memory_space<vmem>>, %arg3: memref<1x256xf32, #tpu.memory_space<vmem>>, %arg4: memref<256x8xf32, #tpu.memory_space<vmem>>, %arg5: memref<1x8xf32, #tpu.memory_space<vmem>>, %arg6: memref<16x8xf32, #tpu.memory_space<vmem>>) attributes {dimension_semantics = [#tpu.dimension_semantics<parallel>], iteration_bounds = array<i64: 1>, scalar_prefetch = 0 : i64, scratch_operands = 0 : i64, tpu.core_type = #tpu.core_type<tc>, window_params = [{transform_indices = @transform_0, window_bounds = array<i64: 16, 32>}, {pipeline_mode = #tpu.pipeline_mode<synchronous>, transform_indices = @transform_1, window_bounds = array<i64: 32, 256>}, {pipeline_mode = #tpu.pipeline_mode<synchronous>, transform_indices = @transform_2, window_bounds = array<i64: 1, 256>}, {pipeline_mode = #tpu.pipeline_mode<synchronous>, transform_indices = @transform_3, window_bounds = array<i64: 256, 8>}, {pipeline_mode = #tpu.pipeline_mode<synchronous>, transform_indices = @transform_4, window_bounds = array<i64: 1, 8>}, {transform_indices = @transform_5, window_bounds = array<i64: 16, 8>}]} {
    %c0 = arith.constant 0 : index
    %c0_0 = arith.constant 0 : index
    %0 = vector.load %arg1[%c0, %c0_0] : memref<16x32xf32, #tpu.memory_space<vmem>>, vector<16x32xf32>
    %c0_1 = arith.constant 0 : index
    %c0_2 = arith.constant 0 : index
    %1 = vector.load %arg2[%c0_1, %c0_2] : memref<32x256xf32, #tpu.memory_space<vmem>>, vector<32x256xf32>
    %cst = arith.constant dense<0.000000e+00> : vector<16x256xf32>
    %2 = tpu.matmul %0, %1, %cst {dimension_numbers = #tpu.dot_dimension_numbers<[1], [0], [0], [1], [0, 0, 1, 1], [], []>} : vector<16x32xf32>, vector<32x256xf32>, vector<16x256xf32> -> vector<16x256xf32>
    %c0_3 = arith.constant 0 : index
    %c0_4 = arith.constant 0 : index
    %3 = vector.load %arg3[%c0_3, %c0_4] : memref<1x256xf32, #tpu.memory_space<vmem>>, vector<1x256xf32>
    %4 = vector.broadcast %3 : vector<1x256xf32> to vector<16x256xf32>
    %5 = arith.addf %2, %4 : vector<16x256xf32>
    %cst_5 = arith.constant 0.000000e+00 : f32
    %6 = vector.broadcast %cst_5 : f32 to vector<16x256xf32>
    %7 = arith.maximumf %5, %6 : vector<16x256xf32>
    %c0_6 = arith.constant 0 : index
    %c0_7 = arith.constant 0 : index
    %8 = vector.load %arg4[%c0_6, %c0_7] : memref<256x8xf32, #tpu.memory_space<vmem>>, vector<256x8xf32>
    %cst_8 = arith.constant dense<0.000000e+00> : vector<16x8xf32>
    %9 = tpu.matmul %7, %8, %cst_8 {dimension_numbers = #tpu.dot_dimension_numbers<[1], [0], [0], [1], [0, 0, 1, 1], [], []>} : vector<16x256xf32>, vector<256x8xf32>, vector<16x8xf32> -> vector<16x8xf32>
    %c0_9 = arith.constant 0 : index
    %c0_10 = arith.constant 0 : index
    %10 = vector.load %arg5[%c0_9, %c0_10] : memref<1x8xf32, #tpu.memory_space<vmem>>, vector<1x8xf32>
    %11 = vector.broadcast %10 : vector<1x8xf32> to vector<16x8xf32>
    %12 = arith.addf %9, %11 : vector<16x8xf32>
    %13 = tpu.iota {dimensions = array<i32: 1>} : vector<16x8xi32>
    %c3_i32 = arith.constant 3 : i32
    %14 = vector.broadcast %c3_i32 : i32 to vector<16x8xi32>
    %15 = arith.cmpi sge, %13, %14 : vector<16x8xi32>
    %c7_i32 = arith.constant 7 : i32
    %16 = vector.broadcast %c7_i32 : i32 to vector<16x8xi32>
    %17 = arith.cmpi slt, %13, %16 : vector<16x8xi32>
    %18 = arith.andi %15, %17 : vector<16x8xi1>
    %19 = arith.mulf %12, %12 : vector<16x8xf32>
    %cst_11 = arith.constant 0.000000e+00 : f32
    %20 = vector.broadcast %cst_11 : f32 to vector<16x8xf32>
    %21 = arith.select %18, %19, %20 : vector<16x8xi1>, vector<16x8xf32>
    %cst_12 = arith.constant dense<0.000000e+00> : vector<16xf32>
    %22 = vector.multi_reduction <add>, %21, %cst_12 [1] : vector<16x8xf32> to vector<16xf32>
    %23 = vector.shape_cast %22 : vector<16xf32> to vector<16x1xf32>
    %cst_13 = arith.constant 9.99999996E-13 : f32
    %24 = vector.broadcast %cst_13 : f32 to vector<16x1xf32>
    %25 = arith.addf %24, %23 : vector<16x1xf32>
    %26 = math.rsqrt %25 : vector<16x1xf32>
    %27 = vector.broadcast %26 : vector<16x1xf32> to vector<16x8xf32>
    %28 = arith.mulf %12, %27 : vector<16x8xf32>
    %29 = arith.select %18, %28, %12 : vector<16x8xi1>, vector<16x8xf32>
    %c0_14 = arith.constant 0 : index
    %c0_15 = arith.constant 0 : index
    %30 = vector.load %arg6[%c0_14, %c0_15] : memref<16x8xf32, #tpu.memory_space<vmem>>, vector<16x8xf32>
    tpu.vector_store %arg6[%c0_14, %c0_15], %29 {strides = array<i32>} : memref<16x8xf32, #tpu.memory_space<vmem>>, vector<16x8xf32>,
    return
  }
  func.func @transform_0(%arg0: i32) -> (i32, i32) {
    %c0_i32 = arith.constant 0 : i32
    %c0_i32_0 = arith.constant 0 : i32
    return %arg0, %c0_i32 : i32, i32
  }
  func.func @transform_1(%arg0: i32) -> (i32, i32) {
    %c0_i32 = arith.constant 0 : i32
    %c0_i32_0 = arith.constant 0 : i32
    %c0_i32_1 = arith.constant 0 : i32
    return %c0_i32, %c0_i32_0 : i32, i32
  }
  func.func @transform_2(%arg0: i32) -> (i32, i32) {
    %c0_i32 = arith.constant 0 : i32
    %c0_i32_0 = arith.constant 0 : i32
    %c0_i32_1 = arith.constant 0 : i32
    return %c0_i32, %c0_i32_0 : i32, i32
  }
  func.func @transform_3(%arg0: i32) -> (i32, i32) {
    %c0_i32 = arith.constant 0 : i32
    %c0_i32_0 = arith.constant 0 : i32
    %c0_i32_1 = arith.constant 0 : i32
    return %c0_i32, %c0_i32_0 : i32, i32
  }
  func.func @transform_4(%arg0: i32) -> (i32, i32) {
    %c0_i32 = arith.constant 0 : i32
    %c0_i32_0 = arith.constant 0 : i32
    %c0_i32_1 = arith.constant 0 : i32
    return %c0_i32, %c0_i32_0 : i32, i32
  }
  func.func @transform_5(%arg0: i32) -> (i32, i32) {
    %c0_i32 = arith.constant 0 : i32
    %c0_i32_0 = arith.constant 0 : i32
    return %arg0, %c0_i32 : i32, i32
  }
}

</mosaic_0001>

<bundles_post_ra>
// kernel: pose_head_pallas.1
= control target key start
LH: loop header
LB: loop body
LE: loop exit
PB: predicated region body
PF: predicated region fallthrough
CT: control target
= control target key end

     0   :  { %v360_v3 = vmov 0.0   ;;  %vm42_vm0 = vcmask 261120   ;;  %v32_v63 = vlaneseq  ;;  %vm253_vm4 = vcmask 64512   ;;  %s547_s1 = inlined_call_operand.vmem [shape: f32[32,256], index: 1, kind: input, shape index: {}]   ;;  %s548_s3 = inlined_call_operand.vmem [shape: f32[256,8], index: 3, kind: input, shape index: {}]   ;;  %s549_s0 = inlined_call_operand.vmem [shape: f32[16,32], index: 0, kind: input, shape index: {}]   ;;  %s550_s2 = inlined_call_operand.vmem [shape: f32[1,256], index: 2, kind: input, shape index: {}]   ;;  %s551_s4 = inlined_call_operand.vmem [shape: f32[1,8], index: 4, kind: input, shape index: {}]   ;;  %s552_s5 = inlined_call_operand.vmem [shape: f32[16,8], index: 5, kind: output, shape index: {}]  }
   0x1   :  { %v23_v0 = vld [vmem:[%s547_s1 + $0x8] sm:$0xff]  ;;  %v25_v1 = vld [vmem:[%s547_s1 + $0x18] sm:$0xff]  ;;  %v22_v2 = vld [vmem:[%s547_s1] sm:$0xff]  ;;  %113 = vmatprep.mubr.f32.mxu0 %v360_v3 }
   0x2   :  { %v315_v4 = vpack.c.bf16 %v25_v1, %v23_v0  ;;  %v24_v5 = vld [vmem:[%s547_s1 + $0x10] sm:$0xff]  ;;  %v27_v6 = vld [vmem:[%s547_s1 + $0x28] sm:$0xff]  ;;  %v29_v7 = vld [vmem:[%s547_s1 + $0x38] sm:$0xff]  ;;  %v33_v0 = vshrl.u32 %v32_v63, 7 }
   0x3   :  { %v317_v8 = vpack.c.bf16 %v24_v5, %v22_v2  ;;  %v319_v9 = vpack.c.bf16 %v29_v7, %v27_v6  ;;  %v26_v10 = vld [vmem:[%s547_s1 + $0x20] sm:$0xff]  ;;  %v28_v11 = vld [vmem:[%s547_s1 + $0x30] sm:$0xff]  ;;  %v147_v13 = vld [vmem:[%s548_s3 + $0x88] sm:$0xff] }
   0x4   :  { %316 = vmatprep.subr.bf16.mxu0 %v315_v4  ;;  %v146_v12 = vld [vmem:[%s548_s3 + $0x80] sm:$0xff]  ;;  %v321_v14 = vpack.c.bf16 %v28_v11, %v26_v10  ;;  %v131_v17 = vld [vmem:[%s548_s3 + $0x8] sm:$0xff]  ;;  %v148_v18 = vld [vmem:[%s548_s3 + $0x90] sm:$0xff]  ;;  %v34_v1 = vsub.s32 0, %v33_v0 }
   0x5   :  { %318 = vmatpush1.bf16.msra.mxu0 %v317_v8  ;;  %v323_v15 = vpack.c.bf16 %v147_v13, %v146_v12  ;;  %v130_v16 = vld [vmem:[%s548_s3] sm:$0xff]  ;;  %v149_v20 = vld [vmem:[%s548_s3 + $0x98] sm:$0xff]  ;;  %v132_v21 = vld [vmem:[%s548_s3 + $0x10] sm:$0xff] }
   0x6   :  { %320 = vmatprep.subr.bf16.mxu0 %v319_v9  ;;  %v325_v19 = vpack.c.bf16 %v131_v17, %v130_v16  ;;  %v133_v22 = vld [vmem:[%s548_s3 + $0x18] sm:$0xff]  ;;  %v327_v23 = vpack.c.bf16 %v149_v20, %v148_v18  ;;  %v150_v24 = vld [vmem:[%s548_s3 + $0xa0] sm:$0xff]  ;;  %v151_v25 = vld [vmem:[%s548_s3 + $0xa8] sm:$0xff]  ;;  %v245_v18 = vand.u32 127, %v32_v63 }
   0x7   :  { %324 = vmatprep.subr.bf16.mxu1 %v323_v15  ;;  %v329_v26 = vpack.c.bf16 %v133_v22, %v132_v21  ;;  %v20_v27 = vld [vmem:[%s549_s0] sm:$0xff]  ;;  %v331_v28 = vpack.c.bf16 %v151_v25, %v150_v24  ;;  %v135_v30 = vld [vmem:[%s548_s3 + $0x28] sm:$0xff]  ;;  %v152_v31 = vld [vmem:[%s548_s3 + $0xb0] sm:$0xff] }
   0x8   :  { %326 = vmatpush3.bf16.msra.mxu1 %v325_v19  ;;  %v134_v29 = vld [vmem:[%s548_s3 + $0x20] sm:$0xff]  ;;  %v153_v32 = vld [vmem:[%s548_s3 + $0xb8] sm:$0xff]  ;;  %v21_v34 = vld [vmem:[%s549_s0 + $0x8] sm:$0xff]  ;;  %vm246_vm1 = vcmp.ge.s32.totalorder %v245_v18, 3  ;;  %vm247_vm2 = vcmp.lt.s32.totalorder %v245_v18, 7 }
   0x9   :  { %322 = vmatpush1.bf16.msra.mxu0 %v321_v14  ;;  %328 = vmatprep.subr.bf16.mxu1 %v327_v23  ;;  %v333_v33 = vpack.c.bf16 %v135_v30, %v134_v29  ;;  %v335_v35 = vpack.c.bf16 %v153_v32, %v152_v31  ;;  %v136_v36 = vld [vmem:[%s548_s3 + $0x30] sm:$0xff]  ;;  %v137_v37 = vld [vmem:[%s548_s3 + $0x38] sm:$0xff]  ;;  %v154_v38 = vld [vmem:[%s548_s3 + $0xc0] sm:$0xff] }
   0xa   :  { %v155_v39 = vld [vmem:[%s548_s3 + $0xc8] sm:$0xff]  ;;  %v337_v40 = vpack.c.bf16 %v137_v37, %v136_v36  ;;  %v138_v42 = vld [vmem:[%s548_s3 + $0x40] sm:$0xff]  ;;  %v156_v44 = vld [vmem:[%s548_s3 + $0xd0] sm:$0xff] }
   0xb   :  { %v339_v41 = vpack.c.bf16 %v155_v39, %v154_v38  ;;  %v139_v43 = vld [vmem:[%s548_s3 + $0x48] sm:$0xff]  ;;  %v157_v45 = vld [vmem:[%s548_s3 + $0xd8] sm:$0xff]  ;;  %v140_v48 = vld [vmem:[%s548_s3 + $0x50] sm:$0xff] }
   0xc   :  { %274 = vmatmul.mubr.msk.f32.vlgmr.msra.gmra.mrb[0].mxu0 %vm42_vm0, %v20_v27  ;;  %330 = vmatpush3.bf16.msra.mxu1 %v329_v26  ;;  %v341_v46 = vpack.c.bf16 %v139_v43, %v138_v42  ;;  %v343_v47 = vpack.c.bf16 %v157_v45, %v156_v44  ;;  %v141_v49 = vld [vmem:[%s548_s3 + $0x58] sm:$0xff]  ;;  %v158_v50 = vld [vmem:[%s548_s3 + $0xe0] sm:$0xff]  ;;  %v159_v51 = vld [vmem:[%s548_s3 + $0xe8] sm:$0xff] }
   0xd   :  { %119 = vmatprep.mubr.f32.mxu0 %v360_v3  ;;  %332 = vmatprep.subr.bf16.mxu1 %v331_v28  ;;  %v345_v52 = vpack.c.bf16 %v141_v49, %v140_v48  ;;  %v347_v53 = vpack.c.bf16 %v159_v51, %v158_v50  ;;  %v142_v54 = vld [vmem:[%s548_s3 + $0x60] sm:$0xff]  ;;  %v143_v55 = vld [vmem:[%s548_s3 + $0x68] sm:$0xff]  ;;  %v160_v57 = vld [vmem:[%s548_s3 + $0xf0] sm:$0xff]  ;;  %v38_v3 = vsub.s32 1, %v33_v0 }
   0xe   :  { %v349_v56 = vpack.c.bf16 %v143_v55, %v142_v54  ;;  %v161_v58 = vld [vmem:[%s548_s3 + $0xf8] sm:$0xff]  ;;  %v144_v60 = vld [vmem:[%s548_s3 + $0x70] sm:$0xff]  ;;  %v30_v2 = vld [vmem:[%s550_s2] sm:$0x3] }
   0xf   :  { %v351_v59 = vpack.c.bf16 %v161_v58, %v160_v57  ;;  %v145_v61 = vld [vmem:[%s548_s3 + $0x78] sm:$0xff]  ;;  %v35_v4 = vrot.slane %v30_v2, %v34_v1  ;;  %v39_v5 = vrot.slane %v30_v2, %v38_v3  ;;  %v276_v20 = vld [vmem:[%s551_s4] ss:$0 sm:$0xff]  ;;  %vm525_vm3 = vmand %vm246_vm1, %vm247_vm2 }
  0x10   :  { %275 = vmatmul.mubr.msk.f32.gmra.mrb[2].mxu0 %vm42_vm0, %v21_v34  ;;  %334 = vmatpush3.bf16.msra.mxu1 %v333_v33  ;;  %v353_v62 = vpack.c.bf16 %v145_v61, %v144_v60 }
  0x11   :  { %336 = vmatprep.subr.bf16.mxu1 %v335_v35 }
  0x14   :  { %338 = vmatpush3.bf16.msra.mxu1 %v337_v40 }
  0x15   :  { %340 = vmatprep.subr.bf16.mxu1 %v339_v41 }
  0x18   :  { %342 = vmatpush3.bf16.msra.mxu1 %v341_v46 }
  0x19   :  { %344 = vmatprep.subr.bf16.mxu1 %v343_v47 }
  0x1c   :  { %346 = vmatpush3.bf16.msra.mxu1 %v345_v52 }
  0x1d   :  { %348 = vmatprep.subr.bf16.mxu1 %v347_v53 }
  0x20   :  { %350 = vmatpush3.bf16.msra.mxu1 %v349_v56 }
  0x21   :  { %352 = vmatprep.subr.bf16.mxu1 %v351_v59 }
  0x24   :  { %354 = vmatpush3.bf16.msra.mxu1 %v353_v62 }
  0xdf   :  { %v115_v6 = vpop.f32.mrb[0].mxu0 }
  0xe0   :  { %v116_v7 = vadd.f32 %v115_v6, %v35_v4  ;;  %v117_v8 = vpop.f32.mrb[1].mxu0 }
  0xe1   :  { %v118_v9 = vadd.f32 %v117_v8, %v39_v5 }
  0xe2   :  { %v126_v12 = vmax.f32 %v116_v7, 0.0 }
  0xe3   :  { %v121_v10 = vpop.f32.mrb[2].mxu0  ;;  %v127_v11 = vmax.f32 %v118_v9, 0.0 }
  0xe4   :  { %v122_v13 = vadd.f32 %v121_v10, %v35_v4  ;;  %v123_v14 = vpop.f32.mrb[3].mxu0 }
  0xe5   :  { %v124_v15 = vadd.f32 %v123_v14, %v39_v5  ;;  %233 = vmatprep.mubr.f32.mxu1 %v127_v11 }
  0xe6   :  { %234 = vmatmul.mubr.f32.vlgmr.msra.gmra.mrb[0].mxu1 %v126_v12  ;;  %v128_v17 = vmax.f32 %v122_v13, 0.0 }
  0xe7   :  { %v129_v16 = vmax.f32 %v124_v15, 0.0 }
  0xe9   :  { %238 = vmatprep.mubr.f32.mxu1 %v129_v16 }
  0xea   :  { %239 = vmatmul.mubr.f32.gmra.mrb[2].mxu1 %v128_v17 }
 0x1b9   :  { %v309_v19 = vpop.f32.mrb[0].mxu1 }
 0x1ba   :  { %v310_v21 = vpop.f32.mrb[1].mxu1 }
 0x1bb   :  { %v311_v22 = vadd.f32 %v310_v21, %v309_v19 }
 0x1bd   :  { %v236_v23 = vadd.f32 %v311_v22, %v276_v20  ;;  %v312_v24 = vpop.f32.mrb[2].mxu1 }
 0x1be   :  { %v313_v25 = vpop.f32.mrb[3].mxu1 }
 0x1bf   :  { %v314_v27 = vadd.f32 %v313_v25, %v312_v24  ;;  %v249_v28 = vmul.f32 %v236_v23, %v236_v23 }
 0x1c1   :  { %v241_v29 = vadd.f32 %v314_v27, %v276_v20  ;;  %v251_v30 = vsel %vm525_vm3, %v249_v28, 0.0 }
 0x1c2   :  { %v254_v31 = vsel %vm253_vm4, %v251_v30, 0.0 }
 0x1c3   :  { %255 = vadd.xlane.f32.xlu0 %v254_v31  ;;  %v250_v32 = vmul.f32 %v241_v29, %v241_v29 }
 0x1c5   :  { %v252_v33 = vsel %vm525_vm3, %v250_v32, 0.0 }
 0x1c6   :  { %v257_v34 = vsel %vm253_vm4, %v252_v33, 0.0 }
 0x1c7   :  { %258 = vadd.xlane.f32.xlu0 %v257_v34 }
 0x250   :  { %v256_v35 = vpop.xlane.xlu0 %255 }
 0x251   :  { %v260_v36 = vadd.f32 1e-12, %v256_v35 }
 0x253   :  { %356 = vrsqrt.f32 %v260_v36 }
 0x254   :  { %v259_v37 = vpop.xlane.xlu0 %258 }
 0x255   :  { %v261_v38 = vadd.f32 1e-12, %v259_v37 }
 0x257   :  { %358 = vrsqrt.f32 %v261_v38 }
 0x25d   :  { %v357_v39 = vpop.eup %356 }
 0x25e   :  { %v264_v40 = vmul.f32 %v357_v39, %v236_v23 }
 0x260   :  { %v266_v41 = vsel %vm525_vm3, %v264_v40, %v236_v23 }
 0x261   :  { %v359_v42 = vpop.eup %358  ;;  %268 = vst.msk [vmem:[%s552_s5] sm:$0xff] %vm253_vm4, %v266_v41 }
 0x262   :  { %v265_v43 = vmul.f32 %v359_v42, %v241_v29 }
 0x264   :  { %v267_v44 = vsel %vm525_vm3, %v265_v43, %v241_v29 }
 0x265   :  { %269 = vst.msk [vmem:[%s552_s5 + $0x8] sm:$0xff] %vm253_vm4, %v267_v44 }

</bundles_post_ra>
